<compile_context>
chip_gen: v6e
topology: v6e:2x2x1
jax: 0.10.0
libtpu: 0.0.40
codegen_flags: <defaults>
</compile_context>

<pallas_src>
import functools

import jax
import jax.numpy as jnp
from jax import lax
from jax.experimental import pallas as pl
from jax.experimental.pallas import tpu as pltpu

_EPS = 1e-8  # matches torch.nn.CosineSimilarity default eps


def _focuser_kernel(x1_ref, x2_ref, rm_ref, y1c_ref, y2c_ref, y1u_ref, y2u_ref,
                    *, mode: str):
    # x1_ref / x2_ref: (1, C, T_HW) VMEM tiles for (batch n, spatial tile t).
    x1 = x1_ref[...].astype(jnp.float32)
    x2 = x2_ref[...].astype(jnp.float32)

    # Cosine similarity along the channel (sublane) axis, PyTorch eps
    # semantics: cos = <x1,x2> / sqrt(max(||x1||^2 * ||x2||^2, eps^2)).
    dot = jnp.sum(x1 * x2, axis=1, keepdims=True)        # (1, 1, T)
    n1sq = jnp.sum(x1 * x1, axis=1, keepdims=True)       # (1, 1, T)
    n2sq = jnp.sum(x2 * x2, axis=1, keepdims=True)       # (1, 1, T)
    inv_denom = lax.rsqrt(jnp.maximum(n1sq * n2sq, _EPS * _EPS))  # one EUP op
    cos = dot * inv_denom

    t = jnp.tanh(1.0 - cos)
    rm = t if mode == 'change' else 1.0 - t               # (1, 1, T)

    rm_ref[...] = rm.astype(rm_ref.dtype)

    # Hoist the sublane broadcast once and reuse it; derive the "unchange"
    # outputs by subtraction instead of extra multiplies/broadcasts.
    rm_b = jnp.broadcast_to(rm, x1.shape)                 # (1, C, T)
    y1c = rm_b * x1
    y2c = rm_b * x2
    y1c_ref[...] = y1c.astype(y1c_ref.dtype)
    y2c_ref[...] = y2c.astype(y2c_ref.dtype)
    y1u_ref[...] = (x1 - y1c).astype(y1u_ref.dtype)
    y2u_ref[...] = (x2 - y2c).astype(y2u_ref.dtype)


def _choose_hw_tile(hw: int, c: int, itemsize: int):
    """Pick (hw_padded, tile).

    hw is rounded up to a multiple of 128 (lane-dense stores).  The tile is a
    multiple of 128 dividing hw_padded, sized so a single (1, C, tile) block
    is ~<=1 MiB: with 7 live arrays x double buffering that stays well under
    the 32 MiB scoped VMEM default and v7x's 64 MiB physical VMEM, while
    still being >=512 lanes for realistic C (near HBM-roofline tiles).
    """
    hw_pad = -(-hw // 128) * 128
    budget = 1 << 20  # ~1 MiB per block
    cap = max(128, min(2048, (budget // max(1, c * itemsize)) // 128 * 128))
    tile = min(cap, hw_pad)
    while hw_pad % tile != 0:
        tile -= 128
    return hw_pad, tile


@functools.partial(jax.jit, static_argnames=('mode',))
def focuser_single(x1, x2, mode: str = 'change'):
    """One (x1, x2) pair, each NCHW. Returns (rm, y1c, y2c, y1u, y2u)."""
    assert x1.shape == x2.shape
    N, C, H, W = x1.shape
    HW = H * W
    x1f = x1.reshape(N, C, HW)
    x2f = x2.reshape(N, C, HW)

    hw_pad, t_hw = _choose_hw_tile(HW, C, jnp.dtype(x1.dtype).itemsize)
    if hw_pad != HW:
        pad = ((0, 0), (0, 0), (0, hw_pad - HW))
        x1f = jnp.pad(x1f, pad)
        x2f = jnp.pad(x2f, pad)
    n_tiles = hw_pad // t_hw

    kernel = functools.partial(_focuser_kernel, mode=mode)

    in_spec = pl.BlockSpec((1, C, t_hw), lambda n, t: (n, 0, t))
    rm_spec = pl.BlockSpec((1, 1, t_hw), lambda n, t: (n, 0, t))
    y_spec = pl.BlockSpec((1, C, t_hw), lambda n, t: (n, 0, t))

    out_shapes = (
        jax.ShapeDtypeStruct((N, 1, hw_pad), x1.dtype),
        jax.ShapeDtypeStruct((N, C, hw_pad), x1.dtype),
        jax.ShapeDtypeStruct((N, C, hw_pad), x2.dtype),
        jax.ShapeDtypeStruct((N, C, hw_pad), x1.dtype),
        jax.ShapeDtypeStruct((N, C, hw_pad), x2.dtype),
    )

    rm, y1c, y2c, y1u, y2u = pl.pallas_call(
        kernel,
        out_shape=out_shapes,
        grid_spec=pltpu.PrefetchScalarGridSpec(
            num_scalar_prefetch=0,
            grid=(N, n_tiles),
            in_specs=[in_spec, in_spec],
            out_specs=[rm_spec, y_spec, y_spec, y_spec, y_spec],
        ),
        compiler_params=pltpu.CompilerParams(
            dimension_semantics=("parallel", "parallel"),
            vmem_limit_bytes=32 * 1024 * 1024,
        ),
    )(x1f, x2f)

    def unpad(a):
        return a[:, :, :HW] if hw_pad != HW else a

    return (unpad(rm).reshape(N, H, W),
            unpad(y1c).reshape(N, C, H, W),
            unpad(y2c).reshape(N, C, H, W),
            unpad(y1u).reshape(N, C, H, W),
            unpad(y2u).reshape(N, C, H, W))


def focuser_forward(X1, X2, mode: str = 'change'):
    """List-of-tensors interface, mirroring Focuser.forward."""
    RM, Y1c, Y2c, Y1u, Y2u = [], [], [], [], []
    for x1, x2 in zip(X1, X2):
        rm, y1c, y2c, y1u, y2u = focuser_single(x1, x2, mode=mode)
        RM.append(rm)
        Y1c.append(y1c)
        Y2c.append(y2c)
        Y1u.append(y1u)
        Y2u.append(y2u)
    return RM, Y1c, Y2c, Y1u, Y2u


def _reference(X1, X2, mode='change'):
    """Pure-JAX reference with PyTorch CosineSimilarity eps semantics."""
    outs = ([], [], [], [], [])
    for x1, x2 in zip(X1, X2):
        dot = jnp.sum(x1 * x2, axis=1)
        n1sq = jnp.sum(x1 * x1, axis=1)
        n2sq = jnp.sum(x2 * x2, axis=1)
        cos = dot / jnp.sqrt(jnp.maximum(n1sq * n2sq, _EPS * _EPS))
        t = jnp.tanh(1.0 - cos)
        rm = t if mode == 'change' else 1.0 - t
        rmb = rm[:, None, :, :]
        outs[0].append(rm)
        outs[1].append(rmb * x1)
        outs[2].append(rmb * x2)
        outs[3].append((1.0 - rmb) * x1)
        outs[4].append((1.0 - rmb) * x2)
    return outs


if __name__ == "__main__":
    key = jax.random.PRNGKey(0)
    k1, k2, k3, k4 = jax.random.split(key, 4)

    # Multi-scale feature-map lists (NCHW), small shapes.
    X1 = [
        jax.random.normal(k1, (2, 4, 16, 16), dtype=jnp.float32),
        jax.random.normal(k2, (2, 8, 8, 8), dtype=jnp.float32),
    ]
    X2 = [
        jax.random.normal(k3, (2, 4, 16, 16), dtype=jnp.float32),
        jax.random.normal(k4, (2, 8, 8, 8), dtype=jnp.float32),
    ]

    ok = True
    for mode in ('change', 'unchange'):
        got = focuser_forward(X1, X2, mode=mode)
        for group in got:
            for t in group:
                jax.block_until_ready(t)
        ref = _reference(X1, X2, mode=mode)
        for g_list, r_list in zip(got, ref):
            for g, r in zip(g_list, r_list):
                if not jnp.allclose(g, r, atol=1e-5, rtol=1e-5):
                    ok = False

    assert ok, "mismatch vs reference"
    print("KERNEL_OK")
</pallas_src>

<mosaic_0001>
module attributes {stable_mosaic.version = 11 : i64} {
  func.func @_focuser_kernel(%arg0: i32, %arg1: i32, %arg2: memref<1x4x256xf32, #tpu.memory_space<vmem>>, %arg3: memref<1x4x256xf32, #tpu.memory_space<vmem>>, %arg4: memref<1x1x256xf32, #tpu.memory_space<vmem>>, %arg5: memref<1x4x256xf32, #tpu.memory_space<vmem>>, %arg6: memref<1x4x256xf32, #tpu.memory_space<vmem>>, %arg7: memref<1x4x256xf32, #tpu.memory_space<vmem>>, %arg8: memref<1x4x256xf32, #tpu.memory_space<vmem>>) attributes {dimension_semantics = [#tpu.dimension_semantics<parallel>, #tpu.dimension_semantics<parallel>], iteration_bounds = array<i64: 2, 1>, scalar_prefetch = 0 : i64, scratch_operands = 0 : i64, tpu.core_type = #tpu.core_type<tc>, window_params = [{transform_indices = @transform_0, window_bounds = array<i64: 1, 4, 256>}, {transform_indices = @transform_1, window_bounds = array<i64: 1, 4, 256>}, {transform_indices = @transform_2, window_bounds = array<i64: 1, 1, 256>}, {transform_indices = @transform_3, window_bounds = array<i64: 1, 4, 256>}, {transform_indices = @transform_4, window_bounds = array<i64: 1, 4, 256>}, {transform_indices = @transform_5, window_bounds = array<i64: 1, 4, 256>}, {transform_indices = @transform_6, window_bounds = array<i64: 1, 4, 256>}]} {
    %c0 = arith.constant 0 : index
    %c0_0 = arith.constant 0 : index
    %c0_1 = arith.constant 0 : index
    %0 = vector.load %arg2[%c0, %c0_0, %c0_1] : memref<1x4x256xf32, #tpu.memory_space<vmem>>, vector<1x4x256xf32>
    %c0_2 = arith.constant 0 : index
    %c0_3 = arith.constant 0 : index
    %c0_4 = arith.constant 0 : index
    %1 = vector.load %arg3[%c0_2, %c0_3, %c0_4] : memref<1x4x256xf32, #tpu.memory_space<vmem>>, vector<1x4x256xf32>
    %2 = arith.mulf %0, %1 : vector<1x4x256xf32>
    %cst = arith.constant dense<0.000000e+00> : vector<1x256xf32>
    %3 = vector.multi_reduction <add>, %2, %cst [1] : vector<1x4x256xf32> to vector<1x256xf32>
    %4 = vector.shape_cast %3 : vector<1x256xf32> to vector<1x1x256xf32>
    %5 = arith.mulf %0, %0 : vector<1x4x256xf32>
    %cst_5 = arith.constant dense<0.000000e+00> : vector<1x256xf32>
    %6 = vector.multi_reduction <add>, %5, %cst_5 [1] : vector<1x4x256xf32> to vector<1x256xf32>
    %7 = vector.shape_cast %6 : vector<1x256xf32> to vector<1x1x256xf32>
    %8 = arith.mulf %1, %1 : vector<1x4x256xf32>
    %cst_6 = arith.constant dense<0.000000e+00> : vector<1x256xf32>
    %9 = vector.multi_reduction <add>, %8, %cst_6 [1] : vector<1x4x256xf32> to vector<1x256xf32>
    %10 = vector.shape_cast %9 : vector<1x256xf32> to vector<1x1x256xf32>
    %11 = arith.mulf %7, %10 : vector<1x1x256xf32>
    %cst_7 = arith.constant 1.000000e-16 : f32
    %12 = vector.broadcast %cst_7 : f32 to vector<1x1x256xf32>
    %13 = arith.maximumf %11, %12 : vector<1x1x256xf32>
    %14 = math.rsqrt %13 : vector<1x1x256xf32>
    %15 = arith.mulf %4, %14 : vector<1x1x256xf32>
    %cst_8 = arith.constant 1.000000e+00 : f32
    %16 = vector.broadcast %cst_8 : f32 to vector<1x1x256xf32>
    %17 = arith.subf %16, %15 : vector<1x1x256xf32>
    %18 = math.tanh %17 : vector<1x1x256xf32>
    %c0_9 = arith.constant 0 : index
    %c0_10 = arith.constant 0 : index
    %c0_11 = arith.constant 0 : index
    %19 = vector.load %arg4[%c0_9, %c0_10, %c0_11] : memref<1x1x256xf32, #tpu.memory_space<vmem>>, vector<1x1x256xf32>
    tpu.vector_store %arg4[%c0_9, %c0_10, %c0_11], %18 {strides = array<i32>} : memref<1x1x256xf32, #tpu.memory_space<vmem>>, vector<1x1x256xf32>,
    %20 = vector.shape_cast %18 : vector<1x1x256xf32> to vector<1x1x256xf32>
    %21 = vector.broadcast %20 : vector<1x1x256xf32> to vector<1x4x256xf32>
    %22 = arith.mulf %21, %0 : vector<1x4x256xf32>
    %23 = arith.mulf %21, %1 : vector<1x4x256xf32>
    %c0_12 = arith.constant 0 : index
    %c0_13 = arith.constant 0 : index
    %c0_14 = arith.constant 0 : index
    %24 = vector.load %arg5[%c0_12, %c0_13, %c0_14] : memref<1x4x256xf32, #tpu.memory_space<vmem>>, vector<1x4x256xf32>
    tpu.vector_store %arg5[%c0_12, %c0_13, %c0_14], %22 {strides = array<i32>} : memref<1x4x256xf32, #tpu.memory_space<vmem>>, vector<1x4x256xf32>,
    %c0_15 = arith.constant 0 : index
    %c0_16 = arith.constant 0 : index
    %c0_17 = arith.constant 0 : index
    %25 = vector.load %arg6[%c0_15, %c0_16, %c0_17] : memref<1x4x256xf32, #tpu.memory_space<vmem>>, vector<1x4x256xf32>
    tpu.vector_store %arg6[%c0_15, %c0_16, %c0_17], %23 {strides = array<i32>} : memref<1x4x256xf32, #tpu.memory_space<vmem>>, vector<1x4x256xf32>,
    %26 = arith.subf %0, %22 : vector<1x4x256xf32>
    %c0_18 = arith.constant 0 : index
    %c0_19 = arith.constant 0 : index
    %c0_20 = arith.constant 0 : index
    %27 = vector.load %arg7[%c0_18, %c0_19, %c0_20] : memref<1x4x256xf32, #tpu.memory_space<vmem>>, vector<1x4x256xf32>
    tpu.vector_store %arg7[%c0_18, %c0_19, %c0_20], %26 {strides = array<i32>} : memref<1x4x256xf32, #tpu.memory_space<vmem>>, vector<1x4x256xf32>,
    %28 = arith.subf %1, %23 : vector<1x4x256xf32>
    %c0_21 = arith.constant 0 : index
    %c0_22 = arith.constant 0 : index
    %c0_23 = arith.constant 0 : index
    %29 = vector.load %arg8[%c0_21, %c0_22, %c0_23] : memref<1x4x256xf32, #tpu.memory_space<vmem>>, vector<1x4x256xf32>
    tpu.vector_store %arg8[%c0_21, %c0_22, %c0_23], %28 {strides = array<i32>} : memref<1x4x256xf32, #tpu.memory_space<vmem>>, vector<1x4x256xf32>,
    return
  }
  func.func @transform_0(%arg0: i32, %arg1: i32) -> (i32, i32, i32) {
    %c0_i32 = arith.constant 0 : i32
    %c0_i32_0 = arith.constant 0 : i32
    return %arg0, %c0_i32, %arg1 : i32, i32, i32
  }
  func.func @transform_1(%arg0: i32, %arg1: i32) -> (i32, i32, i32) {
    %c0_i32 = arith.constant 0 : i32
    %c0_i32_0 = arith.constant 0 : i32
    return %arg0, %c0_i32, %arg1 : i32, i32, i32
  }
  func.func @transform_2(%arg0: i32, %arg1: i32) -> (i32, i32, i32) {
    %c0_i32 = arith.constant 0 : i32
    %c0_i32_0 = arith.constant 0 : i32
    return %arg0, %c0_i32, %arg1 : i32, i32, i32
  }
  func.func @transform_3(%arg0: i32, %arg1: i32) -> (i32, i32, i32) {
    %c0_i32 = arith.constant 0 : i32
    %c0_i32_0 = arith.constant 0 : i32
    return %arg0, %c0_i32, %arg1 : i32, i32, i32
  }
  func.func @transform_4(%arg0: i32, %arg1: i32) -> (i32, i32, i32) {
    %c0_i32 = arith.constant 0 : i32
    %c0_i32_0 = arith.constant 0 : i32
    return %arg0, %c0_i32, %arg1 : i32, i32, i32
  }
  func.func @transform_5(%arg0: i32, %arg1: i32) -> (i32, i32, i32) {
    %c0_i32 = arith.constant 0 : i32
    %c0_i32_0 = arith.constant 0 : i32
    return %arg0, %c0_i32, %arg1 : i32, i32, i32
  }
  func.func @transform_6(%arg0: i32, %arg1: i32) -> (i32, i32, i32) {
    %c0_i32 = arith.constant 0 : i32
    %c0_i32_0 = arith.constant 0 : i32
    return %arg0, %c0_i32, %arg1 : i32, i32, i32
  }
}

</mosaic_0001>

<bundles_post_ra>
// kernel: focuser_single.1
= control target key start
LH: loop header
LB: loop body
LE: loop exit
PB: predicated region body
PF: predicated region fallthrough
CT: control target
= control target key end

     0   :  { %s952_s21 = smov 0   ;;  %s954_s22 = smov 0   ;;  %s1036_s0 = inlined_call_operand.vmem [shape: f32[2,4,256], index: 0, kind: input, shape index: {}]   ;;  %s1037_s1 = inlined_call_operand.vmem [shape: f32[2,4,256], index: 1, kind: input, shape index: {}]   ;;  %s1038_s2 = inlined_call_operand.vmem [shape: f32[2,1,256], index: 2, kind: output, shape index: {0}]   ;;  %s1039_s3 = inlined_call_operand.vmem [shape: f32[2,4,256], index: 3, kind: output, shape index: {1}]   ;;  %s1040_s4 = inlined_call_operand.vmem [shape: f32[2,4,256], index: 4, kind: output, shape index: {2}]   ;;  %s1041_s5 = inlined_call_operand.vmem [shape: f32[2,4,256], index: 5, kind: output, shape index: {3}]   ;;  %s1042_s6 = inlined_call_operand.vmem [shape: f32[2,4,256], index: 6, kind: output, shape index: {4}]  }
   0x1   :  { %s956_s23 = smov 0  }
   0x2 LB: > { %s29_s24 = sadd.s32 1, %s910_s22  ;;  %p837_p0 = scmp.ge.s32.totalorder %s914_s23, 1  ;;  %s914_s23 = sphi %s956_s23, %s17_s23   ;;  %s910_s22 = sphi %s954_s22, %s1044_s22   ;;  %s906_s21 = sphi %s952_s21, %s1043_s21  }
   0x3   : > { %p31_p1 = scmp.ge.s32.totalorder %s29_s24, 2  ;;  %p267_p2 = scmp.lt.s32.totalorder %s914_s23, 3 }
   0x5   : > { %s1046_s24 = smov (%p31_p1, %s29_s24), 0  ;;  %p268_p3 = pnand %p837_p0, %p267_p2 }
   0x6   : > { %p350_p4 = scmp.lt.s32.totalorder (!%p268_p3), %s906_s21, 1 }
   0x7   : > { %271 = sbr.rel (%p268_p3) target bundleno = 78 (0x4e), region = 28 }
   0xc   : > { %s1048_s21 = smov (!%p350_p4, %s906_s21), 1  ;;  %vm424_vm0 = vcmask 1043456   ;;  %v916_v60 = vmov 1966171168   ;;  %v493_v62 = vlaneseq }
   0xd   : > { %s973_s25 = sshll.u32 %s1048_s21, 3  ;;  %v491_v61 = vunpack.c.l.s4 %v916_v60  ;;  %s842_s8 = sshll.u32 %s1048_s21, 1 }
   0xe   : > { %s357_s28 = scalar_lea.vmem %s1036_s0, %s973_s25  ;;  %s367_s7 = scalar_lea.vmem %s1037_s1, %s973_s25  ;;  %vm507_vm1 = vcmp.lt.s32.totalorder %v493_v62, 256 }
   0xf   : > { %v983_v0 = vld [vmem:[%s357_s28] sm:$0xff]  ;;  %v492_v63 = vunpack.c.0.s8 %v491_v61  ;;  %s386_s11 = scalar_lea.vmem %s1039_s3, %s973_s25  ;;  %s396_s14 = scalar_lea.vmem %s1040_s4, %s973_s25 }
  0x10   : > { %v985_v1 = vld [vmem:[%s367_s7] sm:$0xff]  ;;  %v439_v2 = vmul.f32 %v983_v0, %v983_v0  ;;  %s376_s17 = scalar_lea.vmem %s1038_s2, %s842_s8  ;;  %s406_s20 = scalar_lea.vmem %s1041_s5, %s973_s25 }
  0x11   : > { %v457_v3 = vmul.f32 %v985_v1, %v985_v1  ;;  %v420_v6 = vmul.f32 %v985_v1, %v983_v0  ;;  %s416_s27 = scalar_lea.vmem %s1042_s6, %s973_s25 }
  0x12   : > { %v441_v4 = vcombine.high %v439_v2, %v439_v2  ;;  %v443_v5 = vsel %vm424_vm0, %v439_v2, 0.0  ;;  %v494_v2 = vshrl.u32 %v493_v62, 7 }
  0x13   : > { %v444_v7 = vrot.slane %v443_v5, 4  ;;  %v459_v8 = vcombine.high %v457_v3, %v457_v3  ;;  %v461_v9 = vsel %vm424_vm0, %v457_v3, 0.0  ;;  %v422_v16 = vcombine.high %v420_v6, %v420_v6 }
  0x14   : > { %v450_v10 = vsel %vm424_vm0, %v441_v4, 0.0  ;;  %v462_v11 = vrot.slane %v461_v9, 4  ;;  %v425_v17 = vsel %vm424_vm0, %v420_v6, 0.0  ;;  %v511_v4 = vcombine.high %v983_v0, %v983_v0 }
  0x15   : > { %v445_v12 = vadd.f32 %v444_v7, %v443_v5  ;;  %v451_v13 = vrot.slane %v450_v10, 4  ;;  %v468_v15 = vsel %vm424_vm0, %v459_v8, 0.0  ;;  %v426_v24 = vrot.slane %v425_v17, 4 }
  0x16   : > { %v463_v14 = vadd.f32 %v462_v11, %v461_v9  ;;  %v469_v21 = vrot.slane %v468_v15, 4  ;;  %v432_v27 = vsel %vm424_vm0, %v422_v16, 0.0  ;;  %v516_v5 = vcombine.high %v985_v1, %v985_v1 }
  0x17   : > { %v446_v18 = vrot.slane %v445_v12, 2  ;;  %v452_v19 = vadd.f32 %v451_v13, %v450_v10  ;;  %v427_v34 = vadd.f32 %v426_v24, %v425_v17  ;;  %v433_v35 = vrot.slane %v432_v27, 4 }
  0x18   : > { %v464_v20 = vrot.slane %v463_v14, 2  ;;  %v470_v26 = vadd.f32 %v469_v21, %v468_v15  ;;  %v495_v6 = vsub.s32 %v492_v63, %v494_v2 }
  0x19   : > { %v447_v22 = vadd.f32 %v446_v18, %v445_v12  ;;  %v453_v23 = vrot.slane %v452_v19, 2  ;;  %v428_v41 = vrot.slane %v427_v34, 2  ;;  %v434_v42 = vadd.f32 %v433_v35, %v432_v27 }
  0x1a   : > { %v465_v25 = vadd.f32 %v464_v20, %v463_v14  ;;  %v471_v31 = vrot.slane %v470_v26, 2 }
  0x1b   : > { %v448_v28 = vrot.slane %v447_v22, 1  ;;  %v454_v29 = vadd.f32 %v453_v23, %v452_v19  ;;  %v429_v46 = vadd.f32 %v428_v41, %v427_v34  ;;  %v435_v47 = vrot.slane %v434_v42, 2 }
  0x1c   : > { %v466_v30 = vrot.slane %v465_v25, 1  ;;  %v472_v37 = vadd.f32 %v471_v31, %v470_v26 }
  0x1d   : > { %v449_v32 = vadd.f32 %v448_v28, %v447_v22  ;;  %v455_v33 = vrot.slane %v454_v29, 1  ;;  %v430_v49 = vrot.slane %v429_v46, 1  ;;  %v436_v50 = vadd.f32 %v435_v47, %v434_v42 }
  0x1e   : > { %v467_v36 = vadd.f32 %v466_v30, %v465_v25  ;;  %v473_v39 = vrot.slane %v472_v37, 1 }
  0x1f   : > { %v456_v38 = vadd.f32 %v455_v33, %v454_v29  ;;  %v431_v51 = vadd.f32 %v430_v49, %v429_v46  ;;  %v437_v52 = vrot.slane %v436_v50, 1 }
  0x20   : > { %v475_v40 = vmul.f32 %v467_v36, %v449_v32  ;;  %v474_v43 = vadd.f32 %v473_v39, %v472_v37 }
  0x21   : > { %v438_v54 = vadd.f32 %v437_v52, %v436_v50 }
  0x22   : > { %v477_v44 = vmax.f32 %v475_v40, 1e-16  ;;  %v476_v45 = vmul.f32 %v474_v43, %v456_v38 }
  0x24   : > { %884 = vrsqrt.f32 %v477_v44  ;;  %v478_v48 = vmax.f32 %v476_v45, 1e-16 }
  0x26   : > { %886 = vrsqrt.f32 %v478_v48 }
  0x31   : > { %v885_v53 = vpop.eup %884 }
  0x32   : > { %v481_v55 = vmul.f32 %v885_v53, %v431_v51 }
  0x33   : > { %v887_v57 = vpop.eup %886 }
  0x34   : > { %v483_v56 = vsub.f32 1.0, %v481_v55  ;;  %v482_v58 = vmul.f32 %v887_v57, %v438_v54 }
  0x36   : > { %888 = vtanh.f32 %v483_v56  ;;  %v484_v59 = vsub.f32 1.0, %v482_v58 }
  0x38   : > { %890 = vtanh.f32 %v484_v59 }
  0x43   : > { %v889_v3 = vpop.eup %888 }
  0x44   : > { %v513_v7 = vmul.f32 %v889_v3, %v983_v0  ;;  %v518_v8 = vmul.f32 %v889_v3, %v985_v1 }
  0x45   : > { %v891_v9 = vpop.eup %890 }
  0x46   : > { %v489_v10 = vcombine.low %v889_v3, %v891_v9  ;;  %v514_v11 = vmul.f32 %v891_v9, %v511_v4  ;;  %v519_v12 = vmul.f32 %v891_v9, %v516_v5 }
  0x48   : > { %v496_v13 = vrot.slane %v489_v10, %v495_v6  ;;  %v522_v14 = vcombine.low %v513_v7, %v514_v11  ;;  %v527_v15 = vcombine.low %v518_v8, %v519_v12 }
  0x4a   : > { %v503_v16 = vrot.slane %v496_v13, %v495_v6  ;;  %524 = vst [vmem:[%s386_s11] sm:$0xff] %v522_v14  ;;  %529 = vst [vmem:[%s396_s14] sm:$0xff] %v527_v15  ;;  %v530_v17 = vsub.f32 %v983_v0, %v522_v14  ;;  %v532_v18 = vsub.f32 %v985_v1, %v527_v15 }
  0x4c   : > { %509 = vst.msk [vmem:[%s376_s17] sm:$0x3] %vm507_vm1, %v503_v16  ;;  %531 = vst [vmem:[%s406_s20] sm:$0xff] %v530_v17 }
  0x4d   : > { %533 = vst [vmem:[%s416_s27] sm:$0xff] %v532_v18 }
  0x4e PF: > { %s17_s23 = sadd.s32 1, %s914_s23   ;;  %s1043_s21 = smov %s910_s22 }
  0x4f   : > { %p14_p5 = scmp.ge.s32.totalorder %s17_s23, 4   ;;  %s1044_s22 = smov %s1046_s24 }
  0x51   :  { %16 = sbr.rel (!%p14_p5) target bundleno = 2 (0x2), region = 109 }

</bundles_post_ra>
